<compile_context>
chip_gen: v7x
topology: tpu7x:2x2x1
jax: 0.10.0
libtpu: 0.0.40
codegen_flags: <defaults>
</compile_context>

<pallas_src>
import functools

import numpy as np
import jax
import jax.numpy as jnp
from jax.experimental import pallas as pl
from jax.experimental.pallas import tpu as pltpu


# ------------------------------ Fused kernel ------------------------------- #

def swav_kernel(map_ref, x_ref, loss_ref, q_ref, acc_ref, *,
                batch_size, num_prototypes, total_crops, crops_for_assign,
                temperature, epsilon, iters):
    del map_ref  # only consumed by the index_map
    B = batch_size
    K = num_prototypes
    num_assign = len(crops_for_assign)
    step = pl.program_id(0)

    # ---- Phase 1: Sinkhorn-Knopp for assignment crop `crops_for_assign[step]`
    @pl.when(step < num_assign)
    def _sinkhorn():
        x = x_ref[...].astype(jnp.float32)
        # Global-max subtraction: cancelled exactly by the first per-prototype
        # normalization; prevents exp overflow for large scores / small epsilon.
        x = x - jnp.max(x)
        Q = jnp.exp(x * jnp.float32(1.0 / epsilon))
        # (Initial global Q/sum(Q) of the reference cancels identically.)
        for _ in range(iters):
            col = jnp.sum(Q, axis=0, keepdims=True)                    # (1, K)
            Q = Q * pl.reciprocal(col * jnp.float32(K), approx=True)   # /col /K
            row = jnp.sum(Q, axis=1, keepdims=True)                    # (B, 1)
            Q = Q * pl.reciprocal(row * jnp.float32(B), approx=True)   # /row /B
        # Reference stores q = B*Q and later divides the CE mean by B; the two
        # cancel, so store Q directly and drop the /B from the final scale.
        q_ref[step] = Q

    # ---- Phase 2 init: zero the CE accumulator at the first CE step ---------
    @pl.when(step == num_assign)
    def _init_acc():
        acc_ref[...] = jnp.zeros_like(acc_ref)

    # ---- Phase 2: cross entropy for view v = step - num_assign --------------
    @pl.when(step >= num_assign)
    def _ce():
        v = step - num_assign
        x = x_ref[...].astype(jnp.float32) * jnp.float32(1.0 / temperature)
        m = jnp.max(x, axis=1, keepdims=True)
        xs = x - m
        logp = xs - jnp.log(jnp.sum(jnp.exp(xs), axis=1, keepdims=True))
        for i, c in enumerate(crops_for_assign):
            part = jnp.sum(q_ref[i] * logp, axis=1, keepdims=True)     # (B, 1)
            # Skip the diagonal pair (view == assignment crop) via a mask.
            acc_ref[...] += jnp.where(v == c, jnp.float32(0.0), part)

    # ---- Finalize: single full reduce of the vector partial -----------------
    @pl.when(step == num_assign + total_crops - 1)
    def _fin():
        scale = jnp.float32(1.0 / ((total_crops - 1) * num_assign))
        loss_ref[0, 0] = -jnp.sum(acc_ref[...]) * scale


# ------------------------------- Wrapper ------------------------------------ #

def swav_loss_pallas(output, nmb_crops, crops_for_assign, batch_size,
                     temperature=0.1, epsilon=0.5, sinkhorn_iterations=3):
    total_crops = int(np.sum(nmb_crops))
    crops_for_assign = tuple(int(c) for c in crops_for_assign)
    num_assign = len(crops_for_assign)
    B = int(batch_size)
    K = int(output.shape[1])
    assert output.shape[0] == total_crops * B

    # View as [total_crops, B, K]; each grid step consumes one (B, K) slab.
    scores = output.reshape(total_crops, B, K)

    # Grid: num_assign Sinkhorn steps followed by total_crops CE steps.  The
    # scalar-prefetched map tells the input BlockSpec which crop slab to DMA.
    step_to_crop = jnp.asarray(list(crops_for_assign) + list(range(total_crops)),
                               dtype=jnp.int32)
    n_steps = num_assign + total_crops

    kernel = functools.partial(
        swav_kernel,
        batch_size=B,
        num_prototypes=K,
        total_crops=total_crops,
        crops_for_assign=crops_for_assign,
        temperature=float(temperature),
        epsilon=float(epsilon),
        iters=int(sinkhorn_iterations),
    )

    # Actual residency: q scratch + double-buffered (B,K) view tile + acc.
    itemsize = 4
    resident = (num_assign + 2) * B * K * itemsize + B * 128 * itemsize
    vmem_limit = max(2 * resident + (8 << 20), 32 << 20)

    loss = pl.pallas_call(
        kernel,
        out_shape=jax.ShapeDtypeStruct((1, 1), jnp.float32),
        grid_spec=pltpu.PrefetchScalarGridSpec(
            num_scalar_prefetch=1,
            grid=(n_steps,),
            in_specs=[pl.BlockSpec((pl.Squeezed(), B, K),
                                   lambda s, m: (m[s], 0, 0))],
            out_specs=pl.BlockSpec(memory_space=pltpu.MemorySpace.SMEM),
            scratch_shapes=[pltpu.VMEM((num_assign, B, K), jnp.float32),
                            pltpu.VMEM((B, 1), jnp.float32)]),
        compiler_params=pltpu.CompilerParams(
            dimension_semantics=("arbitrary",),
            vmem_limit_bytes=int(vmem_limit)),
    )(step_to_crop, scores)
    return loss[0, 0]


# ---------------------------- Pure-JAX reference --------------------------- #

def _sinkhorn_ref(out, epsilon, iters):
    Q = jnp.exp(out / epsilon).T
    B = Q.shape[1]
    K = Q.shape[0]
    Q = Q / jnp.sum(Q)
    for _ in range(iters):
        Q = Q / jnp.sum(Q, axis=1, keepdims=True)
        Q = Q / K
        Q = Q / jnp.sum(Q, axis=0, keepdims=True)
        Q = Q / B
    Q = Q * B
    return Q.T


def swav_loss_ref(output, nmb_crops, crops_for_assign, batch_size,
                  temperature=0.1, epsilon=0.5, sinkhorn_iterations=3):
    total_crops = int(np.sum(nmb_crops))
    loss = 0.0
    for crop_id in crops_for_assign:
        out = output[batch_size * crop_id:batch_size * (crop_id + 1)]
        q = _sinkhorn_ref(out, epsilon, sinkhorn_iterations)[-batch_size:]
        subloss = 0.0
        for v in np.delete(np.arange(total_crops), crop_id):
            x = output[batch_size * v:batch_size * (v + 1)] / temperature
            logp = jax.nn.log_softmax(x, axis=1)
            subloss = subloss - jnp.mean(jnp.sum(q * logp, axis=1))
        loss = loss + subloss / (total_crops - 1)
    loss = loss / len(crops_for_assign)
    return loss


# ---------------------------------- Main ------------------------------------ #

if __name__ == "__main__":
    key = jax.random.PRNGKey(0)

    batch_size = 8          # batch per crop (multiple of 8 -> sublane aligned)
    num_prototypes = 128    # K (multiple of 128 -> lane aligned)
    nmb_crops = [2, 2]      # 4 total crops
    crops_for_assign = [0, 1]
    total_crops = int(np.sum(nmb_crops))

    output = jax.random.normal(
        key, (total_crops * batch_size, num_prototypes), dtype=jnp.float32)

    loss = swav_loss_pallas(output, nmb_crops, crops_for_assign, batch_size,
                            temperature=0.1, epsilon=0.5, sinkhorn_iterations=3)
    loss = jax.block_until_ready(loss)

    ref = swav_loss_ref(output, nmb_crops, crops_for_assign, batch_size,
                        temperature=0.1, epsilon=0.5, sinkhorn_iterations=3)
    # Tolerance accommodates the EUP approximate reciprocals in the Sinkhorn
    # normalizations (relative error per vrcp is well below 1e-3).
    np.testing.assert_allclose(np.asarray(loss), np.asarray(ref),
                               rtol=5e-3, atol=5e-3)

    print("KERNEL_OK")
</pallas_src>

<mosaic_0001>
module attributes {stable_mosaic.version = 11 : i64} {
  func.func @swav_kernel(%arg0: i32, %arg1: memref<6xi32, #tpu.memory_space<smem>>, %arg2: memref<1x8x128xf32, #tpu.memory_space<vmem>>, %arg3: memref<1x1xf32, #tpu.memory_space<smem>>, %arg4: memref<2x8x128xf32, #tpu.memory_space<vmem>>, %arg5: memref<8x1xf32, #tpu.memory_space<vmem>>) attributes {dimension_semantics = [#tpu.dimension_semantics<arbitrary>], iteration_bounds = array<i64: 6>, scalar_prefetch = 1 : i64, scratch_operands = 2 : i64, tpu.core_type = #tpu.core_type<tc>, window_params = [{transform_indices = @transform_0, window_bounds = array<i64: 1, 8, 128>}, {transform_indices = @transform_1, window_bounds = array<i64: 1, 1>}]} {
    %c2_i32 = arith.constant 2 : i32
    %0 = arith.cmpi slt, %arg0, %c2_i32 : i32
    %1 = arith.extui %0 : i1 to i32
    %c0_i32 = arith.constant 0 : i32
    %2 = arith.cmpi ne, %1, %c0_i32 : i32
    scf.if %2 {
      %c0 = arith.constant 0 : index
      %c0_5 = arith.constant 0 : index
      %c0_6 = arith.constant 0 : index
      %12 = vector.load %arg2[%c0, %c0_5, %c0_6] : memref<1x8x128xf32, #tpu.memory_space<vmem>>, vector<1x8x128xf32>
      %13 = vector.shape_cast %12 : vector<1x8x128xf32> to vector<8x128xf32>
      %14 = vector.shape_cast %13 : vector<8x128xf32> to vector<1x8x128xf32>
      %cst = arith.constant dense<0xFF800000> : vector<1xf32>
      %15 = vector.multi_reduction <maximumf>, %14, %cst [1, 2] : vector<1x8x128xf32> to vector<1xf32>
      %16 = vector.shape_cast %15 : vector<1xf32> to vector<1x1x1xf32>
      %17 = vector.extract %16[0, 0, 0] : f32 from vector<1x1x1xf32>
      %18 = vector.broadcast %17 : f32 to vector<8x128xf32>
      %19 = arith.subf %13, %18 : vector<8x128xf32>
      %cst_7 = arith.constant 2.000000e+00 : f32
      %20 = vector.broadcast %cst_7 : f32 to vector<8x128xf32>
      %21 = arith.mulf %19, %20 : vector<8x128xf32>
      %22 = math.exp %21 : vector<8x128xf32>
      %cst_8 = arith.constant dense<0.000000e+00> : vector<128xf32>
      %23 = vector.multi_reduction <add>, %22, %cst_8 [0] : vector<8x128xf32> to vector<128xf32>
      %24 = vector.shape_cast %23 : vector<128xf32> to vector<1x128xf32>
      %cst_9 = arith.constant 1.280000e+02 : f32
      %25 = vector.broadcast %cst_9 : f32 to vector<1x128xf32>
      %26 = arith.mulf %24, %25 : vector<1x128xf32>
      %27 = tpu.reciprocal %26 {approx = true} : vector<1x128xf32> -> vector<1x128xf32>
      %28 = vector.broadcast %27 : vector<1x128xf32> to vector<8x128xf32>
      %29 = arith.mulf %22, %28 : vector<8x128xf32>
      %cst_10 = arith.constant dense<0.000000e+00> : vector<8xf32>
      %30 = vector.multi_reduction <add>, %29, %cst_10 [1] : vector<8x128xf32> to vector<8xf32>
      %31 = vector.shape_cast %30 : vector<8xf32> to vector<8x1xf32>
      %cst_11 = arith.constant 8.000000e+00 : f32
      %32 = vector.broadcast %cst_11 : f32 to vector<8x1xf32>
      %33 = arith.mulf %31, %32 : vector<8x1xf32>
      %34 = tpu.reciprocal %33 {approx = true} : vector<8x1xf32> -> vector<8x1xf32>
      %35 = vector.broadcast %34 : vector<8x1xf32> to vector<8x128xf32>
      %36 = arith.mulf %29, %35 : vector<8x128xf32>
      %cst_12 = arith.constant dense<0.000000e+00> : vector<128xf32>
      %37 = vector.multi_reduction <add>, %36, %cst_12 [0] : vector<8x128xf32> to vector<128xf32>
      %38 = vector.shape_cast %37 : vector<128xf32> to vector<1x128xf32>
      %cst_13 = arith.constant 1.280000e+02 : f32
      %39 = vector.broadcast %cst_13 : f32 to vector<1x128xf32>
      %40 = arith.mulf %38, %39 : vector<1x128xf32>
      %41 = tpu.reciprocal %40 {approx = true} : vector<1x128xf32> -> vector<1x128xf32>
      %42 = vector.broadcast %41 : vector<1x128xf32> to vector<8x128xf32>
      %43 = arith.mulf %36, %42 : vector<8x128xf32>
      %cst_14 = arith.constant dense<0.000000e+00> : vector<8xf32>
      %44 = vector.multi_reduction <add>, %43, %cst_14 [1] : vector<8x128xf32> to vector<8xf32>
      %45 = vector.shape_cast %44 : vector<8xf32> to vector<8x1xf32>
      %cst_15 = arith.constant 8.000000e+00 : f32
      %46 = vector.broadcast %cst_15 : f32 to vector<8x1xf32>
      %47 = arith.mulf %45, %46 : vector<8x1xf32>
      %48 = tpu.reciprocal %47 {approx = true} : vector<8x1xf32> -> vector<8x1xf32>
      %49 = vector.broadcast %48 : vector<8x1xf32> to vector<8x128xf32>
      %50 = arith.mulf %43, %49 : vector<8x128xf32>
      %cst_16 = arith.constant dense<0.000000e+00> : vector<128xf32>
      %51 = vector.multi_reduction <add>, %50, %cst_16 [0] : vector<8x128xf32> to vector<128xf32>
      %52 = vector.shape_cast %51 : vector<128xf32> to vector<1x128xf32>
      %cst_17 = arith.constant 1.280000e+02 : f32
      %53 = vector.broadcast %cst_17 : f32 to vector<1x128xf32>
      %54 = arith.mulf %52, %53 : vector<1x128xf32>
      %55 = tpu.reciprocal %54 {approx = true} : vector<1x128xf32> -> vector<1x128xf32>
      %56 = vector.broadcast %55 : vector<1x128xf32> to vector<8x128xf32>
      %57 = arith.mulf %50, %56 : vector<8x128xf32>
      %cst_18 = arith.constant dense<0.000000e+00> : vector<8xf32>
      %58 = vector.multi_reduction <add>, %57, %cst_18 [1] : vector<8x128xf32> to vector<8xf32>
      %59 = vector.shape_cast %58 : vector<8xf32> to vector<8x1xf32>
      %cst_19 = arith.constant 8.000000e+00 : f32
      %60 = vector.broadcast %cst_19 : f32 to vector<8x1xf32>
      %61 = arith.mulf %59, %60 : vector<8x1xf32>
      %62 = tpu.reciprocal %61 {approx = true} : vector<8x1xf32> -> vector<8x1xf32>
      %63 = vector.broadcast %62 : vector<8x1xf32> to vector<8x128xf32>
      %64 = arith.mulf %57, %63 : vector<8x128xf32>
      %65 = arith.index_cast %arg0 : i32 to index
      %c0_20 = arith.constant 0 : index
      %c0_21 = arith.constant 0 : index
      %66 = vector.load %arg4[%65, %c0_20, %c0_21] : memref<2x8x128xf32, #tpu.memory_space<vmem>>, vector<1x8x128xf32>
      %67 = vector.shape_cast %66 : vector<1x8x128xf32> to vector<8x128xf32>
      %68 = vector.shape_cast %64 : vector<8x128xf32> to vector<1x8x128xf32>
      tpu.vector_store %arg4[%65, %c0_20, %c0_21], %68 {strides = array<i32>} : memref<2x8x128xf32, #tpu.memory_space<vmem>>, vector<1x8x128xf32>,
    } else {
    }
    %c2_i32_0 = arith.constant 2 : i32
    %3 = arith.cmpi eq, %arg0, %c2_i32_0 : i32
    %4 = arith.extui %3 : i1 to i32
    %c0_i32_1 = arith.constant 0 : i32
    %5 = arith.cmpi ne, %4, %c0_i32_1 : i32
    scf.if %5 {
      %cst = arith.constant 0.000000e+00 : f32
      %12 = vector.broadcast %cst : f32 to vector<8x1xf32>
      %c0 = arith.constant 0 : index
      %c0_5 = arith.constant 0 : index
      %13 = vector.load %arg5[%c0, %c0_5] : memref<8x1xf32, #tpu.memory_space<vmem>>, vector<8x1xf32>
      tpu.vector_store %arg5[%c0, %c0_5], %12 {strides = array<i32>} : memref<8x1xf32, #tpu.memory_space<vmem>>, vector<8x1xf32>,
    } else {
    }
    %c2_i32_2 = arith.constant 2 : i32
    %6 = arith.cmpi sge, %arg0, %c2_i32_2 : i32
    %7 = arith.extui %6 : i1 to i32
    %c0_i32_3 = arith.constant 0 : i32
    %8 = arith.cmpi ne, %7, %c0_i32_3 : i32
    scf.if %8 {
      %c2_i32_5 = arith.constant 2 : i32
      %12 = arith.subi %arg0, %c2_i32_5 : i32
      %c0 = arith.constant 0 : index
      %c0_6 = arith.constant 0 : index
      %c0_7 = arith.constant 0 : index
      %13 = vector.load %arg2[%c0, %c0_6, %c0_7] : memref<1x8x128xf32, #tpu.memory_space<vmem>>, vector<1x8x128xf32>
      %14 = vector.shape_cast %13 : vector<1x8x128xf32> to vector<8x128xf32>
      %cst = arith.constant 1.000000e+01 : f32
      %15 = vector.broadcast %cst : f32 to vector<8x128xf32>
      %16 = arith.mulf %14, %15 : vector<8x128xf32>
      %cst_8 = arith.constant dense<0xFF800000> : vector<8xf32>
      %17 = vector.multi_reduction <maximumf>, %16, %cst_8 [1] : vector<8x128xf32> to vector<8xf32>
      %18 = vector.shape_cast %17 : vector<8xf32> to vector<8x1xf32>
      %19 = vector.broadcast %18 : vector<8x1xf32> to vector<8x128xf32>
      %20 = arith.subf %16, %19 : vector<8x128xf32>
      %21 = math.exp %20 : vector<8x128xf32>
      %cst_9 = arith.constant dense<0.000000e+00> : vector<8xf32>
      %22 = vector.multi_reduction <add>, %21, %cst_9 [1] : vector<8x128xf32> to vector<8xf32>
      %23 = vector.shape_cast %22 : vector<8xf32> to vector<8x1xf32>
      %24 = math.log %23 : vector<8x1xf32>
      %25 = vector.broadcast %24 : vector<8x1xf32> to vector<8x128xf32>
      %26 = arith.subf %20, %25 : vector<8x128xf32>
      %c0_10 = arith.constant 0 : index
      %c0_11 = arith.constant 0 : index
      %c0_12 = arith.constant 0 : index
      %27 = vector.load %arg4[%c0_10, %c0_11, %c0_12] : memref<2x8x128xf32, #tpu.memory_space<vmem>>, vector<1x8x128xf32>
      %28 = vector.shape_cast %27 : vector<1x8x128xf32> to vector<8x128xf32>
      %29 = arith.mulf %28, %26 : vector<8x128xf32>
      %cst_13 = arith.constant dense<0.000000e+00> : vector<8xf32>
      %30 = vector.multi_reduction <add>, %29, %cst_13 [1] : vector<8x128xf32> to vector<8xf32>
      %31 = vector.shape_cast %30 : vector<8xf32> to vector<8x1xf32>
      %c0_14 = arith.constant 0 : index
      %c0_15 = arith.constant 0 : index
      %32 = vector.load %arg5[%c0_14, %c0_15] : memref<8x1xf32, #tpu.memory_space<vmem>>, vector<8x1xf32>
      %c0_i32_16 = arith.constant 0 : i32
      %33 = arith.cmpi eq, %12, %c0_i32_16 : i32
      %cst_17 = arith.constant 0.000000e+00 : f32
      %34 = vector.broadcast %cst_17 : f32 to vector<8x1xf32>
      %35 = arith.select %33, %34, %31 : vector<8x1xf32>
      %36 = arith.addf %32, %35 : vector<8x1xf32>
      %c0_18 = arith.constant 0 : index
      %c0_19 = arith.constant 0 : index
      %37 = vector.load %arg5[%c0_18, %c0_19] : memref<8x1xf32, #tpu.memory_space<vmem>>, vector<8x1xf32>
      tpu.vector_store %arg5[%c0_18, %c0_19], %36 {strides = array<i32>} : memref<8x1xf32, #tpu.memory_space<vmem>>, vector<8x1xf32>,
      %c1 = arith.constant 1 : index
      %c0_20 = arith.constant 0 : index
      %c0_21 = arith.constant 0 : index
      %38 = vector.load %arg4[%c1, %c0_20, %c0_21] : memref<2x8x128xf32, #tpu.memory_space<vmem>>, vector<1x8x128xf32>
      %39 = vector.shape_cast %38 : vector<1x8x128xf32> to vector<8x128xf32>
      %40 = arith.mulf %39, %26 : vector<8x128xf32>
      %cst_22 = arith.constant dense<0.000000e+00> : vector<8xf32>
      %41 = vector.multi_reduction <add>, %40, %cst_22 [1] : vector<8x128xf32> to vector<8xf32>
      %42 = vector.shape_cast %41 : vector<8xf32> to vector<8x1xf32>
      %c0_23 = arith.constant 0 : index
      %c0_24 = arith.constant 0 : index
      %43 = vector.load %arg5[%c0_23, %c0_24] : memref<8x1xf32, #tpu.memory_space<vmem>>, vector<8x1xf32>
      %c1_i32 = arith.constant 1 : i32
      %44 = arith.cmpi eq, %12, %c1_i32 : i32
      %cst_25 = arith.constant 0.000000e+00 : f32
      %45 = vector.broadcast %cst_25 : f32 to vector<8x1xf32>
      %46 = arith.select %44, %45, %42 : vector<8x1xf32>
      %47 = arith.addf %43, %46 : vector<8x1xf32>
      %c0_26 = arith.constant 0 : index
      %c0_27 = arith.constant 0 : index
      %48 = vector.load %arg5[%c0_26, %c0_27] : memref<8x1xf32, #tpu.memory_space<vmem>>, vector<8x1xf32>
      tpu.vector_store %arg5[%c0_26, %c0_27], %47 {strides = array<i32>} : memref<8x1xf32, #tpu.memory_space<vmem>>, vector<8x1xf32>,
    } else {
    }
    %c5_i32 = arith.constant 5 : i32
    %9 = arith.cmpi eq, %arg0, %c5_i32 : i32
    %10 = arith.extui %9 : i1 to i32
    %c0_i32_4 = arith.constant 0 : i32
    %11 = arith.cmpi ne, %10, %c0_i32_4 : i32
    scf.if %11 {
      %c0 = arith.constant 0 : index
      %c0_5 = arith.constant 0 : index
      %12 = vector.load %arg5[%c0, %c0_5] : memref<8x1xf32, #tpu.memory_space<vmem>>, vector<8x1xf32>
      %13 = vector.shape_cast %12 : vector<8x1xf32> to vector<1x8x1xf32>
      %cst = arith.constant dense<0.000000e+00> : vector<1xf32>
      %14 = vector.multi_reduction <add>, %13, %cst [1, 2] : vector<1x8x1xf32> to vector<1xf32>
      %15 = vector.shape_cast %14 : vector<1xf32> to vector<1x1x1xf32>
      %16 = vector.extract %15[0, 0, 0] : f32 from vector<1x1x1xf32>
      %cst_6 = arith.constant 0.000000e+00 : f32
      %17 = arith.subf %cst_6, %16 : f32
      %cst_7 = arith.constant 0.166666672 : f32
      %18 = arith.mulf %17, %cst_7 : f32
      %c0_8 = arith.constant 0 : index
      %c0_9 = arith.constant 0 : index
      %19 = memref.load %arg3[%c0_8, %c0_9] : memref<1x1xf32, #tpu.memory_space<smem>>
      memref.store %18, %arg3[%c0_8, %c0_9] : memref<1x1xf32, #tpu.memory_space<smem>>
    } else {
    }
    return
  }
  func.func @transform_0(%arg0: i32, %arg1: memref<6xi32, #tpu.memory_space<smem>>) -> (i32, i32, i32) {
    %0 = arith.index_cast %arg0 : i32 to index
    %1 = memref.load %arg1[%0] : memref<6xi32, #tpu.memory_space<smem>>
    %c0_i32 = arith.constant 0 : i32
    %c0_i32_0 = arith.constant 0 : i32
    %c0_i32_1 = arith.constant 0 : i32
    return %1, %c0_i32, %c0_i32_0 : i32, i32, i32
  }
  func.func @transform_1(%arg0: i32, %arg1: memref<6xi32, #tpu.memory_space<smem>>) -> (i32, i32) {
    %c0_i32 = arith.constant 0 : i32
    %c0_i32_0 = arith.constant 0 : i32
    %c0_i32_1 = arith.constant 0 : i32
    return %c0_i32, %c0_i32_0 : i32, i32
  }
}

</mosaic_0001>

<bundles_post_ra>
// kernel: tpu_custom_call.1
= control target key start
LH: loop header
LB: loop body
LE: loop exit
PB: predicated region body
PF: predicated region fallthrough
CT: control target
= control target key end

     0   :  { %s656_s0 = inlined_call_operand.hbm [shape: s32[6], index: 0, kind: input, shape index: {}]   ;;  %s657_s1 = inlined_call_operand.hbm [shape: f32[4,8,128], index: 1, kind: input, shape index: {}]   ;;  %s658_s2 = inlined_call_operand.hbm [shape: f32[1,1], index: 2, kind: output, shape index: {}]  }
   0x1   :  { %s411_s11 = scalar_lea.hbm %s656_s0, 16 }
   0x2   :  { %p412_p0 = scmp.ne.s32.totalorder %s656_s0, %s411_s11  ;;  %p415_p1 = scmp.lt.u32.totalorder %s411_s11, %s656_s0 }
   0x4   :  { %p417_p2 = pnand %p415_p1, %p412_p0 }
   0x6   :  { %420 = shalt.err (!%p417_p2)  }
   0x7   :  { %s505_s16 = smov [#allocation5]  }
   0x8   :  { %8 = dma.hbm_to_smem %s656_s0, 16, %s505_s16, [#allocation4] }
   0x9   :  { %479 = dma.done.wait [#allocation4], 16 }
   0xa   :  { %480 = vsyncadd [#allocation4], 4294967280 }
   0xb   :  { %10 = sfence }
   0xc   :  { %11 = vsyncpa [#allocation7], 0 }
   0xd   :  { %13 = vsyncpa [#allocation7 + $0x1], 0 }
   0xe   :  { %14 = vsyncpa [#allocation8], 0  ;;  %s536_s19 = smov 0   ;;  %s538_s20 = smov 0  }
   0xf   :  { %s540_s21 = smov 0   ;;  %s542_s22 = smov 0  }
  0x10 LB: > { %s552_s0 = sadd.s32 4294967295, %s503_s22   ;;  %s554_s23 = sadd.s32 1, %s503_s22   ;;  %s503_s22 = sphi %s542_s22, %s667_s22   ;;  %s499_s21 = sphi %s540_s21, %s666_s21   ;;  %s495_s20 = sphi %s538_s20, %s665_s20   ;;  %s491_s19 = sphi %s536_s19, %s664_s19  }
  0x11   : > { %s24_s24 = sld [smem:[#allocation5 + %s503_s22]]  ;;  %p36_p3 = scmp.ne.s32.totalorder %s499_s21, %s495_s20 }
  0x12   : > { %s25_s25 = sld [smem:[#allocation5 + %s554_s23]]  ;;  %p37_p4 = scmp.eq.s32.totalorder %s503_s22, 0 }
  0x13   : > { %p42_p5 = scmp.ne.s32.totalorder %s495_s20, %s491_s19  ;;  %p43_p6 = scmp.eq.s32.totalorder %s552_s0, 0 }
  0x14   : > { %s29_s26 = sadd.s32 1, %s499_s21  ;;  %p38_p7 = por %p37_p4, %p36_p3 }
  0x15   : > { %p562_p8 = por %p43_p6, %p42_p5  ;;  %s87_s28 = sand.u32 1, %s499_s21  }
  0x16   : > { %p355_p9 = scmp.lt.s32.totalorder %s503_s22, 6  ;;  %s323_s30 = sshll.u32 %s87_s28, 3 }
  0x17   : > { %s660_s27 = scalar_select %p562_p8, 1, 0 }
  0x18   : > { %s26_s29 = ssub.s32 %s24_s24, %s25_s25  ;;  %p567_p11 = pnand %p355_p9, %p38_p7 }
  0x19   : > { %p27_p10 = scmp.eq.s32.totalorder %s26_s29, 0  ;;  %p325_p12 = scmp.ge.s32.totalorder %s503_s22, 1 }
  0x1a   : > { %s341_s5 = scalar_select %p38_p7, [#allocation5], [#allocation10] }
  0x1b   : > { %s572_s4 = scalar_select %p27_p10, %s499_s21, %s29_s26  }
  0x1c   : > { %s342_s6 = scalar_select %p38_p7, %s503_s22, 0 }
  0x1d   : > { %s669_s5 = smov (!%p355_p9, %s341_s5), [#allocation11]  ;;  %p104_p13 = scmp.lt.s32.totalorder %s503_s22, 7 }
  0x1e   : > { %s671_s6 = smov (!%p355_p9, %s342_s6), 0  ;;  %s91_s8 = scalar_lea.vmem [#allocation6], %s323_s30 }
  0x1f   : > { %s92_s7 = sld [smem:[%s669_s5 + %s671_s6]]  ;;  %s99_s9 = sshll.u32 %s91_s8, 4  ;;  %s578_s9 = int_to_ptr.vmem [resolvable:$true] %s99_s9 }
  0x20   : > { %p574_p0 = pnand %p325_p12, %p104_p13  ;;  %s88_s15 = scalar_lea.sflag [#allocation7], %s87_s28 }
  0x21   : > { %p423_p2 = pneg %p567_p11  ;;  %s426_s19 = scalar_lea.hbm %s657_s1, 512 }
  0x25   : > { %s324_s11 = sshll.u32 %s92_s7, 7 }
  0x26   : > { %s583_s14 = scalar_lea.hbm %s657_s1, %s324_s11 }
  0x27   : > { %s421_s16 = scalar_lea.hbm %s583_s14, 128  ;;  %p427_p5 = scmp.lt.u32.totalorder %s583_s14, %s657_s1 }
  0x28   : > { %p422_p1 = scmp.ne.s32.totalorder %s583_s14, %s421_s16  ;;  %p428_p6 = scmp.lt.u32.totalorder %s426_s19, %s421_s16 }
  0x29   : > { %p430_p9 = scmp.lt.u32.totalorder %s421_s16, %s583_s14 }
  0x2a   : > { %p424_p3 = pnand %p423_p2, %p422_p1  ;;  %p429_p7 = por %p428_p6, %p427_p5 }
  0x2c   : > { %p425_p4 = pneg %p424_p3  ;;  %p431_p10 = por %p430_p9, %p429_p7 }
  0x2e   : > { %p432_p12 = pnand %p431_p10, %p425_p4 }
  0x30   : > { %435 = shalt.err (!%p432_p12)
}
  0x31   : > { %s436_s25 = scalar_lea.vmem %s578_s9, 128  ;;  %s506_s26 = smov [#allocation6]  }
  0x32   : > { %p437_p13 = scmp.ne.s32.totalorder %s578_s9, %s436_s25  ;;  %s441_s28 = sshll.u32 %s506_s26, 4  ;;  %s442_s28 = int_to_ptr.vmem [resolvable:$false] %s441_s28 }
  0x33   : > { %s443_s29 = scalar_lea.vmem %s442_s28, 256  ;;  %p444_p8 = scmp.lt.s32.totalorder %s578_s9, %s442_s28 }
  0x34   : > { %p439_p1 = pnand %p437_p13, %p423_p2  ;;  %p445_p5 = scmp.lt.s32.totalorder %s443_s29, %s436_s25 }
  0x36   : > { %p440_p3 = pneg %p439_p1  ;;  %p446_p6 = por %p445_p5, %p444_p8 }
  0x38   : > { %p447_p7 = pnand %p446_p6, %p440_p3 }
  0x3a   : > { %450 = shalt.err (!%p447_p7)
}
  0x3b   : > { %354 = dma.hbm_to_vmem [thread:$0]  (!%p567_p11), %s583_s14, 128, %s578_s9, %s88_s15  }
  0x3c   : > { %108 = sbr.rel (%p574_p0) target bundleno = 1562 (0x61a), region = 24  ;;  %s110_s30 = sand.u32 (!%p574_p0), 1, %s495_s20  }
  0x3d   : > { %s613_s5 = sshll.u32 (!%p574_p0), %s110_s30, 3  ;;  %s111_s6 = scalar_lea.sflag (!%p574_p0), [#allocation7], %s110_s30 }
  0x3e   : > { %s114_s7 = scalar_lea.vmem (!%p574_p0), [#allocation6], %s613_s5  ;;  %p663_p2 = scmp.ne.s32.totalorder (!%p574_p0), %s660_s27, 0 }
  0x43   : > { %482 = dma.done.wait (%p663_p2), %s111_s6, 128  }
  0x44   : > { %484 = vsyncadd (%p663_p2), %s111_s6, 4294967168  ;;  %p327_p8 = scmp.ge.s32.totalorder %s552_s0, 2 }
  0x45   : > { %v133_v0 = vld [vmem:[%s114_s7] sm:$0xff] (!%p327_p8)  ;;  %s328_s27 = sshll.u32 (!%p327_p8), %s552_s0, 3 }
  0x46   : > { %132 = sbr.rel (%p327_p8) target bundleno = 845 (0x34d), region = 32  ;;  %134 = vmax.xlane.f32.xlu0 (!%p327_p8), %v133_v0  ;;  %s191_s8 = scalar_lea.vmem (!%p327_p8), [#allocation2], %s328_s27 }
  0xd3   : > { %v135_v1 = vpop.xlane.xlu0 %134 }
  0xd4   : > { %v136_v2 = vrot.slane %v135_v1, 4 }
  0xd6   : > { %v137_v3 = vmax.f32 %v135_v1, %v136_v2 }
  0xd8   : > { %v138_v4 = vrot.slane %v137_v3, 2 }
  0xda   : > { %v139_v5 = vmax.f32 %v137_v3, %v138_v4 }
  0xdc   : > { %v140_v6 = vrot.slane %v139_v5, 1 }
  0xde   : > { %v141_v7 = vmax.f32 %v139_v5, %v140_v6 }
  0xe0   : > { %337 = vpush %v141_v7 }
 0x111   : > { %s338_s3 = spop %337 }
 0x112   : > { %v143_v8 = vstv %s338_s3 }
 0x113   : > { %v144_v9 = vsub.f32 %v133_v0, %v143_v8 }
 0x115   : > { %v145_v10 = vmul.f32 2.0, %v144_v9 }
 0x117   : > { %v146_v11 = vmul.f32 1.442695, %v145_v10 }
 0x119   : > { %393 = vpow2.f32 %v146_v11 }
 0x123   : > { %v394_v12 = vpop.eup %393 }
 0x124   : > { %v148_v13 = vrot.slane %v394_v12, 4 }
 0x126   : > { %v149_v14 = vadd.f32 %v394_v12, %v148_v13 }
 0x128   : > { %v150_v15 = vrot.slane %v149_v14, 2 }
 0x12a   : > { %v151_v16 = vadd.f32 %v150_v15, %v149_v14 }
 0x12c   : > { %v152_v17 = vrot.slane %v151_v16, 1 }
 0x12e   : > { %v153_v18 = vadd.f32 %v152_v17, %v151_v16 }
 0x130   : > { %v154_v19 = vmul.f32 128.0, %v153_v18 }
 0x132   : > { %395 = vrcp.f32 %v154_v19 }
 0x13c   : > { %v396_v20 = vpop.eup %395 }
 0x13d   : > { %v156_v21 = vmul.f32 %v396_v20, %v394_v12 }
 0x13f   : > { %157 = vadd.xlane.f32.xlu0 %v156_v21 }
 0x1cc   : > { %v158_v22 = vpop.xlane.xlu0 %157 }
 0x1cd   : > { %v159_v23 = vmul.f32 8.0, %v158_v22 }
 0x1cf   : > { %397 = vrcp.f32 %v159_v23 }
 0x1d9   : > { %v398_v24 = vpop.eup %397 }
 0x1da   : > { %v161_v25 = vmul.f32 %v398_v24, %v156_v21 }
 0x1dc   : > { %v162_v26 = vrot.slane %v161_v25, 4 }
 0x1de   : > { %v163_v27 = vadd.f32 %v162_v26, %v161_v25 }
 0x1e0   : > { %v164_v28 = vrot.slane %v163_v27, 2 }
 0x1e2   : > { %v165_v29 = vadd.f32 %v164_v28, %v163_v27 }
 0x1e4   : > { %v166_v30 = vrot.slane %v165_v29, 1 }
 0x1e6   : > { %v167_v31 = vadd.f32 %v166_v30, %v165_v29 }
 0x1e8   : > { %v168_v32 = vmul.f32 128.0, %v167_v31 }
 0x1ea   : > { %399 = vrcp.f32 %v168_v32 }
 0x1f4   : > { %v400_v33 = vpop.eup %399 }
 0x1f5   : > { %v170_v34 = vmul.f32 %v400_v33, %v161_v25 }
 0x1f7   : > { %171 = vadd.xlane.f32.xlu1 %v170_v34 }
 0x284   : > { %v172_v35 = vpop.xlane.xlu1 %171 }
 0x285   : > { %v173_v36 = vmul.f32 8.0, %v172_v35 }
 0x287   : > { %401 = vrcp.f32 %v173_v36 }
 0x291   : > { %v402_v37 = vpop.eup %401 }
 0x292   : > { %v175_v38 = vmul.f32 %v402_v37, %v170_v34 }
 0x294   : > { %v176_v39 = vrot.slane %v175_v38, 4 }
 0x296   : > { %v177_v40 = vadd.f32 %v176_v39, %v175_v38 }
 0x298   : > { %v178_v41 = vrot.slane %v177_v40, 2 }
 0x29a   : > { %v179_v42 = vadd.f32 %v178_v41, %v177_v40 }
 0x29c   : > { %v180_v43 = vrot.slane %v179_v42, 1 }
 0x29e   : > { %v181_v44 = vadd.f32 %v180_v43, %v179_v42 }
 0x2a0   : > { %v182_v45 = vmul.f32 128.0, %v181_v44 }
 0x2a2   : > { %403 = vrcp.f32 %v182_v45 }
 0x2ac   : > { %v404_v46 = vpop.eup %403 }
 0x2ad   : > { %v184_v47 = vmul.f32 %v404_v46, %v175_v38 }
 0x2af   : > { %185 = vadd.xlane.f32.xlu1 %v184_v47 }
 0x33c   : > { %v186_v48 = vpop.xlane.xlu1 %185 }
 0x33d   : > { %v187_v49 = vmul.f32 8.0, %v186_v48 }
 0x33f   : > { %405 = vrcp.f32 %v187_v49 }
 0x349   : > { %v406_v50 = vpop.eup %405 }
 0x34a   : > { %v189_v51 = vmul.f32 %v406_v50, %v184_v47 }
 0x34c   : > { %192 = vst [vmem:[%s191_s8] sm:$0xff] %v189_v51 }
 0x34d PF: > { %p329_p11 = scmp.ne.s32.totalorder %s552_s0, 2 }
 0x34e   : > { %vm197_vm0 = vcmask (!%p329_p11), 7168   ;;  %v507_v52 = vmov (!%p329_p11), 0.0  }
 0x34f   : > { %196 = sbr.rel (%p329_p11) target bundleno = 854 (0x356), region = 36  ;;  %198 = vst.msk [vmem:[#allocation3] sm:$0xff] (!%p329_p11), %vm197_vm0, %v507_v52 }
 0x356 PF: > { %p330_p0 = scmp.lt.s32.totalorder %s552_s0, 2 }
 0x357   : > { %v204_v53 = vld [vmem:[%s114_s7] sm:$0xff] (!%p330_p0)  ;;  %v230_v1 = vld [vmem:[#allocation2 + $0x8] sm:$0xff] (!%p330_p0)  ;;  %s331_s9 = sadd.s32 (!%p330_p0), 4294967294, %s552_s0  ;;  %v220_v4 = vld [vmem:[#allocation3] sm:$0xff] (!%p330_p0)  ;;  %vm227_vm2 = vcmask (!%p330_p0), 7168  }
 0x358   : > { %202 = sbr.rel (%p330_p0) target bundleno = 1330 (0x532), region = 40  ;;  %v205_v54 = vmul.f32 (!%p330_p0), 10.0, %v204_v53  ;;  %v216_v62 = vld [vmem:[#allocation2] sm:$0xff] (!%p330_p0)  ;;  %p221_p4 = scmp.eq.s32.totalorder (!%p330_p0), %s331_s9, 0 }
 0x359   : > { %p235_p9 = scmp.eq.s32.totalorder (!%p330_p0), %s331_s9, 1 }
 0x35a   : > { %206 = vmax.xlane.f32.xlu0 (!%p330_p0), %v205_v54 }
 0x35f   : > { %s222_s10 = scalar_select %p221_p4, 1, 0 }
 0x360   : > { %s236_s11 = scalar_select %p235_p9, 1, 0 }
 0x361   : > { %v223_v3 = vstv %s222_s10 }
 0x362   : > { %vm224_vm1 = vcmp.eq.s32.totalorder %v223_v3, 1  ;;  %v237_v8 = vstv %s236_s11 }
 0x363   : > { %vm238_vm3 = vcmp.eq.s32.totalorder %v237_v8, 1 }
 0x3e7   : > { %v207_v55 = vpop.xlane.xlu0 %206 }
 0x3e8   : > { %v208_v56 = vsub.f32 %v205_v54, %v207_v55 }
 0x3ea   : > { %v209_v57 = vmul.f32 1.442695, %v208_v56 }
 0x3ec   : > { %407 = vpow2.f32 %v209_v57 }
 0x3f6   : > { %v408_v58 = vpop.eup %407 }
 0x3f7   : > { %211 = vadd.xlane.f32.xlu0 %v408_v58 }
 0x484   : > { %v212_v59 = vpop.xlane.xlu0 %211 }
 0x485   : > { %409 = vlog2.f32 %v212_v59 }
 0x48f   : > { %v410_v60 = vpop.eup %409 }
 0x490   : > { %v214_v61 = vmul.f32 0.6931472, %v410_v60 }
 0x492   : > { %v215_v63 = vsub.f32 %v208_v56, %v214_v61 }
 0x494   : > { %v217_v0 = vmul.f32 %v216_v62, %v215_v63  ;;  %v231_v2 = vmul.f32 %v230_v1, %v215_v63 }
 0x496   : > { %218 = vadd.xlane.f32.xlu1 %v217_v0 }
 0x49a   : > { %232 = vadd.xlane.f32.xlu1 %v231_v2 }
 0x523   : > { %v219_v5 = vpop.xlane.xlu1 %218 }
 0x524   : > { %v225_v6 = vsel %vm224_vm1, 0.0, %v219_v5 }
 0x525   : > { %v226_v7 = vadd.f32 %v225_v6, %v220_v4 }
 0x527   : > { %228 = vst.msk [vmem:[#allocation3] sm:$0xff] %vm227_vm2, %v226_v7  ;;  %v233_v9 = vpop.xlane.xlu1 %232 }
 0x528   : > { %v239_v11 = vsel %vm238_vm3, 0.0, %v233_v9 }
 0x52e   : > { %v234_v10 = vld [vmem:[#allocation3] sm:$0xff] }
 0x52f   : > { %v240_v12 = vadd.f32 %v239_v11, %v234_v10 }
 0x531   : > { %241 = vst.msk [vmem:[#allocation3] sm:$0xff] %vm227_vm2, %v240_v12 }
 0x532 PF: > { %p332_p10 = scmp.ne.s32.totalorder %s552_s0, 5 }
 0x533   : > { %vm247_vm4 = vcmask (!%p332_p10), 7168  }
 0x534   : > { %245 = sbr.rel (%p332_p10) target bundleno = 1547 (0x60b), region = 44 }
 0x538   : > { %v246_v13 = vld [vmem:[#allocation3] sm:$0xff] (!%p332_p10) }
 0x539   : > { %v248_v14 = vsel (!%p332_p10), %vm247_vm4, %v246_v13, 0.0 }
 0x53a   : > { %249 = vadd.xlane.f32.xlu0 (!%p332_p10), %v248_v14 }
 0x5c7   : > { %v250_v15 = vpop.xlane.xlu0 %249 }
 0x5c8   : > { %v251_v16 = vrot.slane %v250_v15, 4 }
 0x5ca   : > { %v252_v17 = vadd.f32 %v251_v16, %v250_v15 }
 0x5cc   : > { %v253_v18 = vrot.slane %v252_v17, 2 }
 0x5ce   : > { %v254_v19 = vadd.f32 %v253_v18, %v252_v17 }
 0x5d0   : > { %v255_v20 = vrot.slane %v254_v19, 1 }
 0x5d2   : > { %v256_v21 = vadd.f32 %v255_v20, %v254_v19 }
 0x5d4   : > { %339 = vpush %v256_v21 }
 0x605   : > { %s340_s12 = spop %339 }
 0x606   : > { %s258_s13 = ssub.f32 0.0, %s340_s12 }
 0x608   : > { %s259_s14 = smul.f32 0.16666667, %s258_s13 }
 0x60a   : > { %261 = sst [smem:[#allocation9]] %s259_s14 }
 0x60b PF: > { %p356_p12 = scmp.eq.s32.totalorder %s552_s0, 5  ;;  %s451_s17 = scalar_lea.hbm %s658_s2, 16 }
 0x60c   : > { %p452_p13 = scmp.ne.s32.totalorder %s658_s2, %s451_s17  ;;  %p457_p5 = scmp.lt.u32.totalorder %s451_s17, %s658_s2 }
 0x60e   : > { %p453_p1 = pnand %p452_p13, %p356_p12 }
 0x610   : > { %p454_p3 = pneg %p453_p1 }
 0x612   : > { %p459_p6 = pnand %p457_p5, %p454_p3 }
 0x614   : > { %462 = shalt.err (!%p459_p6)
}
 0x615   : > { %s508_s25 = smov [#allocation9]  }
 0x616   : > { %346 = dma.smem_to_hbm (%p356_p12), %s508_s25, 16, %s658_s2, [#allocation8]  }
 0x617   : > { %486 = dma.done.wait (%p356_p12), [#allocation8], 16  }
 0x618   : > { %488 = vsyncadd (%p356_p12), [#allocation8], 4294967280 }
 0x619   : > { %275 = sfence }
 0x61a PF: > { %p17_p7 = scmp.ge.s32.totalorder %s554_s23, 8   ;;  %s664_s19 = smov %s495_s20 }
 0x61b   : > { %s665_s20 = smov %s499_s21  ;;  %s666_s21 = smov %s572_s4 }
 0x61c   : > { %s667_s22 = smov %s554_s23  ;;  %19 = sbr.rel (!%p17_p7) target bundleno = 16 (0x10), region = 80 }
 0x623   :  { %281 = vsyncpa [#allocation7], 1 }
 0x624   :  { %283 = vsyncpa [#allocation7 + $0x1], 1 }
 0x625   :  { %284 = vsyncpa [#allocation8], 1 }
 0x626   :  { %286 = vsyncpa [#allocation8 + $0x1], 1 }

</bundles_post_ra>
